<compile_context>
chip_gen: v7x
topology: tpu7x:2x2x1
jax: 0.10.0
libtpu: 0.0.40
codegen_flags: <defaults>
</compile_context>

<pallas_src>
import functools

import jax
import jax.numpy as jnp
from jax import lax
from jax.experimental import pallas as pl
from jax.experimental.pallas import tpu as pltpu

_HALO = 8  # sublane-aligned halo rows on each side of a time tile (>= kernel_size // 2)


def _layer_norm(h, gamma, beta, eps=1e-5):
    mu = jnp.mean(h, axis=-1, keepdims=True)
    var = jnp.mean((h - mu) ** 2, axis=-1, keepdims=True)
    return (h - mu) * lax.rsqrt(var + eps) * gamma + beta


def encoder_layer_kernel(len_ref,                # scalar-prefetch: [B] int32 lengths (SMEM)
                         x_ref, xp_ref, xn_ref,  # (1,tT,D) tile + (1,HALO,D) prev/next halos
                         vecs_ref,               # (K+5, D): conv taps, ln1 g/b, b2, ln2 g/b
                         b1_ref,                 # (1, F)
                         w1_ref, w2_ref,         # (D,F) / (F,D), bf16
                         o_ref,                  # (1, tT, D)
                         buf_ref,                # VMEM scratch (HALO+tT+HALO, D) f32
                         *, kernel_size, pad, halo, block_t):
    K = kernel_size
    tT = block_t
    D = x_ref.shape[2]

    b = pl.program_id(0)
    t = pl.program_id(1)
    T = pl.num_programs(1) * tT
    L = len_ref[b]
    t0 = t * tT

    vecs = vecs_ref[...]                               # (K+5, D) f32
    x = x_ref[0].astype(jnp.float32)                   # (tT, D)

    # --- build zero-padded conv slab [halo | tile | halo] along time -------
    row = lax.broadcasted_iota(jnp.int32, (tT, 1), 0) + t0
    buf_ref[halo:halo + tT, :] = jnp.where(row < L, x, 0.0)

    prow = lax.broadcasted_iota(jnp.int32, (halo, 1), 0) + (t0 - halo)
    buf_ref[0:halo, :] = jnp.where((prow >= 0) & (prow < L),
                                   xp_ref[0].astype(jnp.float32), 0.0)

    nrow = lax.broadcasted_iota(jnp.int32, (halo, 1), 0) + (t0 + tT)
    buf_ref[halo + tT:halo + tT + halo, :] = jnp.where(
        (nrow < L) & (nrow < T), xn_ref[0].astype(jnp.float32), 0.0)

    # --- lightweight depthwise conv along time: K static-slice FMAs --------
    conv = jnp.zeros((tT, D), jnp.float32)
    for k in range(K):
        off = halo - pad + k
        conv = conv + buf_ref[off:off + tT, :] * vecs[k][None, :]

    # residual + LayerNorm (norm_pos='after'); dropout == identity in eval
    h = _layer_norm(x + conv, vecs[K][None, :], vecs[K + 1][None, :])

    # Position-wise FFN: bf16 MXU operands, f32 accumulation
    f = jnp.dot(h.astype(jnp.bfloat16), w1_ref[...],
                preferred_element_type=jnp.float32) + b1_ref[...]
    f = jnp.maximum(f, 0.0)
    f = jnp.dot(f.astype(jnp.bfloat16), w2_ref[...],
                preferred_element_type=jnp.float32) + vecs[K + 2][None, :]

    out = _layer_norm(h + f, vecs[K + 3][None, :], vecs[K + 4][None, :])
    o_ref[0] = out.astype(o_ref.dtype)


def encoder_layer(x, mask, params, *, kernel_size, n_heads, block_t=256):
    B, T, D = x.shape
    F_ = params["w1"].shape[1]
    K = kernel_size
    pad = K // 2
    assert pad <= _HALO, "kernel_size too large for the fixed halo"
    assert D % n_heads == 0

    tT = min(block_t, T)
    assert tT % _HALO == 0 and T % tT == 0, "T must tile into HALO-aligned blocks"
    nT = T // tT
    R = tT // _HALO          # time-tile size in HALO-row blocks
    nHB = T // _HALO         # total HALO-row blocks along T

    # TODO(synk): assumes the padding mask is a prefix (length) mask, as usual
    # for a seq2seq encoder; lengths go through scalar prefetch (SMEM) instead
    # of a lane-sparse [B, T, 1] mask tensor.
    lengths = jnp.sum(mask.astype(jnp.int32), axis=-1).astype(jnp.int32)

    # softmax-normalized per-head conv kernel, expanded to per-channel [K, D]
    w_soft = jax.nn.softmax(params["conv_w"].astype(jnp.float32), axis=-1)    # [H, K]
    w_exp = jnp.repeat(w_soft, D // n_heads, axis=0).T                        # [K, D]

    # pack all small per-channel vectors into one slab -> one DMA descriptor
    vecs = jnp.concatenate([
        w_exp,
        params["ln1_g"].reshape(1, D), params["ln1_b"].reshape(1, D),
        params["b2"].reshape(1, D),
        params["ln2_g"].reshape(1, D), params["ln2_b"].reshape(1, D),
    ], axis=0).astype(jnp.float32)                                            # [K+5, D]
    b1 = params["b1"].reshape(1, F_).astype(jnp.float32)
    w1 = params["w1"].astype(jnp.bfloat16)
    w2 = params["w2"].astype(jnp.bfloat16)

    kernel = functools.partial(encoder_layer_kernel, kernel_size=K, pad=pad,
                               halo=_HALO, block_t=tT)

    grid_spec = pltpu.PrefetchScalarGridSpec(
        num_scalar_prefetch=1,
        grid=(B, nT),
        in_specs=[
            pl.BlockSpec((1, tT, D), lambda b, t, lens: (b, t, 0)),          # x tile
            pl.BlockSpec((1, _HALO, D),                                      # prev halo
                         lambda b, t, lens: (b, jnp.maximum(t * R - 1, 0), 0)),
            pl.BlockSpec((1, _HALO, D),                                      # next halo
                         lambda b, t, lens: (b, jnp.minimum(t * R + R, nHB - 1), 0)),
            pl.BlockSpec((K + 5, D), lambda b, t, lens: (0, 0)),             # packed vectors
            pl.BlockSpec((1, F_), lambda b, t, lens: (0, 0)),                # b1
            pl.BlockSpec((D, F_), lambda b, t, lens: (0, 0)),                # W1 (bf16)
            pl.BlockSpec((F_, D), lambda b, t, lens: (0, 0)),                # W2 (bf16)
        ],
        out_specs=pl.BlockSpec((1, tT, D), lambda b, t, lens: (b, t, 0)),
        scratch_shapes=[pltpu.VMEM((_HALO + tT + _HALO, D), jnp.float32)],
    )

    return pl.pallas_call(
        kernel,
        out_shape=jax.ShapeDtypeStruct((B, T, D), x.dtype),
        grid_spec=grid_spec,
        compiler_params=pltpu.CompilerParams(
            dimension_semantics=("parallel", "parallel"),
            vmem_limit_bytes=48 * 1024 * 1024,
        ),
    )(lengths, x, x, x, vecs, b1, w1, w2)


def ref_forward(x, mask, params, *, kernel_size, n_heads):
    """Pure-JAX reference of the same math (bf16 MXU operands, f32 accumulation)."""
    B, T, D = x.shape
    K = kernel_size
    pad = K // 2
    w_soft = jax.nn.softmax(params["conv_w"], axis=-1)
    w_exp = jnp.repeat(w_soft, D // n_heads, axis=0).T            # [K, D]
    xm = x * mask[:, :, None]
    xpad = jnp.pad(xm, ((0, 0), (pad, pad), (0, 0)))
    conv = sum(w_exp[k][None, None, :] * xpad[:, k:k + T, :] for k in range(K))

    def ln(h, g, b, eps=1e-5):
        mu = h.mean(-1, keepdims=True)
        var = ((h - mu) ** 2).mean(-1, keepdims=True)
        return (h - mu) / jnp.sqrt(var + eps) * g + b

    h = ln(x + conv, params["ln1_g"], params["ln1_b"])
    f = jnp.einsum("btd,df->btf", h.astype(jnp.bfloat16),
                   params["w1"].astype(jnp.bfloat16),
                   preferred_element_type=jnp.float32) + params["b1"]
    f = jnp.maximum(f, 0.0)
    f = jnp.einsum("btf,fd->btd", f.astype(jnp.bfloat16),
                   params["w2"].astype(jnp.bfloat16),
                   preferred_element_type=jnp.float32) + params["b2"]
    return ln(h + f, params["ln2_g"], params["ln2_b"])


if __name__ == "__main__":
    # small but lane-dense shapes: batch=2, seq=32, d_model=128, d_ff=256
    B, T, D, F_, H, K = 2, 32, 128, 256, 4, 3

    key = jax.random.PRNGKey(0)
    ks = jax.random.split(key, 6)
    x = jax.random.normal(ks[0], (B, T, D), jnp.float32)
    lengths = jnp.array([T, 20], jnp.int32)
    mask = (jnp.arange(T)[None, :] < lengths[:, None]).astype(jnp.float32)   # [B, T]

    params = dict(
        conv_w=jax.random.normal(ks[1], (H, K), jnp.float32),
        ln1_g=jnp.ones((D,), jnp.float32), ln1_b=jnp.zeros((D,), jnp.float32),
        w1=jax.random.normal(ks[2], (D, F_), jnp.float32) * 0.1,
        b1=jax.random.normal(ks[3], (F_,), jnp.float32) * 0.1,
        w2=jax.random.normal(ks[4], (F_, D), jnp.float32) * 0.1,
        b2=jax.random.normal(ks[5], (D,), jnp.float32) * 0.1,
        ln2_g=jnp.ones((D,), jnp.float32), ln2_b=jnp.zeros((D,), jnp.float32),
    )

    # block_t=16 so the demo exercises multiple time tiles and the halo logic.
    out = encoder_layer(x, mask, params, kernel_size=K, n_heads=H, block_t=16)
    out = jax.block_until_ready(out)

    ref = ref_forward(x, mask, params, kernel_size=K, n_heads=H)
    assert out.shape == (B, T, D), out.shape
    err = float(jnp.max(jnp.abs(out - ref)))
    assert jnp.allclose(out, ref, atol=1e-2, rtol=1e-2), err
    print("KERNEL_OK")
</pallas_src>

<mosaic_0001>
module attributes {stable_mosaic.version = 11 : i64} {
  func.func @encoder_layer_kernel(%arg0: i32, %arg1: i32, %arg2: memref<2xi32, #tpu.memory_space<smem>>, %arg3: memref<1x16x128xf32, #tpu.memory_space<vmem>>, %arg4: memref<1x8x128xf32, #tpu.memory_space<vmem>>, %arg5: memref<1x8x128xf32, #tpu.memory_space<vmem>>, %arg6: memref<8x128xf32, #tpu.memory_space<vmem>>, %arg7: memref<1x256xf32, #tpu.memory_space<vmem>>, %arg8: memref<128x256xbf16, #tpu.memory_space<vmem>>, %arg9: memref<256x128xbf16, #tpu.memory_space<vmem>>, %arg10: memref<1x16x128xf32, #tpu.memory_space<vmem>>, %arg11: memref<32x128xf32, #tpu.memory_space<vmem>>) attributes {dimension_semantics = [#tpu.dimension_semantics<parallel>, #tpu.dimension_semantics<parallel>], iteration_bounds = array<i64: 2, 2>, scalar_prefetch = 1 : i64, scratch_operands = 1 : i64, tpu.core_type = #tpu.core_type<tc>, window_params = [{transform_indices = @transform_0, window_bounds = array<i64: 1, 16, 128>}, {transform_indices = @transform_1, window_bounds = array<i64: 1, 8, 128>}, {transform_indices = @transform_2, window_bounds = array<i64: 1, 8, 128>}, {pipeline_mode = #tpu.pipeline_mode<synchronous>, transform_indices = @transform_3, window_bounds = array<i64: 8, 128>}, {pipeline_mode = #tpu.pipeline_mode<synchronous>, transform_indices = @transform_4, window_bounds = array<i64: 1, 256>}, {pipeline_mode = #tpu.pipeline_mode<synchronous>, transform_indices = @transform_5, window_bounds = array<i64: 128, 256>}, {pipeline_mode = #tpu.pipeline_mode<synchronous>, transform_indices = @transform_6, window_bounds = array<i64: 256, 128>}, {transform_indices = @transform_7, window_bounds = array<i64: 1, 16, 128>}]} {
    %0 = arith.index_cast %arg0 : i32 to index
    %1 = memref.load %arg2[%0] : memref<2xi32, #tpu.memory_space<smem>>
    %c16_i32 = arith.constant 16 : i32
    %2 = arith.muli %arg1, %c16_i32 : i32
    %c0 = arith.constant 0 : index
    %c0_0 = arith.constant 0 : index
    %3 = vector.load %arg6[%c0, %c0_0] : memref<8x128xf32, #tpu.memory_space<vmem>>, vector<8x128xf32>
    %c0_1 = arith.constant 0 : index
    %c0_2 = arith.constant 0 : index
    %c0_3 = arith.constant 0 : index
    %4 = vector.load %arg3[%c0_1, %c0_2, %c0_3] : memref<1x16x128xf32, #tpu.memory_space<vmem>>, vector<1x16x128xf32>
    %5 = vector.shape_cast %4 : vector<1x16x128xf32> to vector<16x128xf32>
    %6 = tpu.iota {dimensions = array<i32: 0>} : vector<16x1xi32>
    %7 = vector.broadcast %2 : i32 to vector<16x1xi32>
    %8 = arith.addi %6, %7 : vector<16x1xi32>
    %9 = vector.broadcast %1 : i32 to vector<16x1xi32>
    %10 = arith.cmpi slt, %8, %9 : vector<16x1xi32>
    %cst = arith.constant 0.000000e+00 : f32
    %11 = vector.shape_cast %10 : vector<16x1xi1> to vector<16x1xi1>
    %12 = vector.broadcast %11 : vector<16x1xi1> to vector<16x128xi1>
    %13 = vector.broadcast %cst : f32 to vector<16x128xf32>
    %14 = arith.select %12, %5, %13 : vector<16x128xi1>, vector<16x128xf32>
    %c8 = arith.constant 8 : index
    %c0_4 = arith.constant 0 : index
    %15 = vector.load %arg11[%c8, %c0_4] : memref<32x128xf32, #tpu.memory_space<vmem>>, vector<16x128xf32>
    tpu.vector_store %arg11[%c8, %c0_4], %14 {strides = array<i32>} : memref<32x128xf32, #tpu.memory_space<vmem>>, vector<16x128xf32>,
    %16 = tpu.iota {dimensions = array<i32: 0>} : vector<8x1xi32>
    %c8_i32 = arith.constant 8 : i32
    %17 = arith.subi %2, %c8_i32 : i32
    %18 = vector.broadcast %17 : i32 to vector<8x1xi32>
    %19 = arith.addi %16, %18 : vector<8x1xi32>
    %c0_i32 = arith.constant 0 : i32
    %20 = vector.broadcast %c0_i32 : i32 to vector<8x1xi32>
    %21 = arith.cmpi sge, %19, %20 : vector<8x1xi32>
    %22 = vector.broadcast %1 : i32 to vector<8x1xi32>
    %23 = arith.cmpi slt, %19, %22 : vector<8x1xi32>
    %24 = arith.andi %21, %23 : vector<8x1xi1>
    %c0_5 = arith.constant 0 : index
    %c0_6 = arith.constant 0 : index
    %c0_7 = arith.constant 0 : index
    %25 = vector.load %arg4[%c0_5, %c0_6, %c0_7] : memref<1x8x128xf32, #tpu.memory_space<vmem>>, vector<1x8x128xf32>
    %26 = vector.shape_cast %25 : vector<1x8x128xf32> to vector<8x128xf32>
    %cst_8 = arith.constant 0.000000e+00 : f32
    %27 = vector.shape_cast %24 : vector<8x1xi1> to vector<8x1xi1>
    %28 = vector.broadcast %27 : vector<8x1xi1> to vector<8x128xi1>
    %29 = vector.broadcast %cst_8 : f32 to vector<8x128xf32>
    %30 = arith.select %28, %26, %29 : vector<8x128xi1>, vector<8x128xf32>
    %c0_9 = arith.constant 0 : index
    %c0_10 = arith.constant 0 : index
    %31 = vector.load %arg11[%c0_9, %c0_10] : memref<32x128xf32, #tpu.memory_space<vmem>>, vector<8x128xf32>
    tpu.vector_store %arg11[%c0_9, %c0_10], %30 {strides = array<i32>} : memref<32x128xf32, #tpu.memory_space<vmem>>, vector<8x128xf32>,
    %32 = tpu.iota {dimensions = array<i32: 0>} : vector<8x1xi32>
    %c16_i32_11 = arith.constant 16 : i32
    %33 = arith.addi %2, %c16_i32_11 : i32
    %34 = vector.broadcast %33 : i32 to vector<8x1xi32>
    %35 = arith.addi %32, %34 : vector<8x1xi32>
    %36 = vector.broadcast %1 : i32 to vector<8x1xi32>
    %37 = arith.cmpi slt, %35, %36 : vector<8x1xi32>
    %c32_i32 = arith.constant 32 : i32
    %38 = vector.broadcast %c32_i32 : i32 to vector<8x1xi32>
    %39 = arith.cmpi slt, %35, %38 : vector<8x1xi32>
    %40 = arith.andi %37, %39 : vector<8x1xi1>
    %c0_12 = arith.constant 0 : index
    %c0_13 = arith.constant 0 : index
    %c0_14 = arith.constant 0 : index
    %41 = vector.load %arg5[%c0_12, %c0_13, %c0_14] : memref<1x8x128xf32, #tpu.memory_space<vmem>>, vector<1x8x128xf32>
    %42 = vector.shape_cast %41 : vector<1x8x128xf32> to vector<8x128xf32>
    %cst_15 = arith.constant 0.000000e+00 : f32
    %43 = vector.shape_cast %40 : vector<8x1xi1> to vector<8x1xi1>
    %44 = vector.broadcast %43 : vector<8x1xi1> to vector<8x128xi1>
    %45 = vector.broadcast %cst_15 : f32 to vector<8x128xf32>
    %46 = arith.select %44, %42, %45 : vector<8x128xi1>, vector<8x128xf32>
    %c24 = arith.constant 24 : index
    %c0_16 = arith.constant 0 : index
    %47 = vector.load %arg11[%c24, %c0_16] : memref<32x128xf32, #tpu.memory_space<vmem>>, vector<8x128xf32>
    tpu.vector_store %arg11[%c24, %c0_16], %46 {strides = array<i32>} : memref<32x128xf32, #tpu.memory_space<vmem>>, vector<8x128xf32>,
    %cst_17 = arith.constant 0.000000e+00 : f32
    %48 = vector.broadcast %cst_17 : f32 to vector<16x128xf32>
    %c7 = arith.constant 7 : index
    %c0_18 = arith.constant 0 : index
    %49 = vector.load %arg11[%c7, %c0_18] : memref<32x128xf32, #tpu.memory_space<vmem>>, vector<16x128xf32>
    %50 = vector.extract_strided_slice %3 {offsets = [0, 0], sizes = [1, 128], strides = [1, 1]} : vector<8x128xf32> to vector<1x128xf32>
    %51 = vector.shape_cast %50 : vector<1x128xf32> to vector<128xf32>
    %52 = vector.shape_cast %51 : vector<128xf32> to vector<1x128xf32>
    %53 = vector.broadcast %52 : vector<1x128xf32> to vector<16x128xf32>
    %54 = arith.mulf %49, %53 : vector<16x128xf32>
    %55 = arith.addf %48, %54 : vector<16x128xf32>
    %c8_19 = arith.constant 8 : index
    %c0_20 = arith.constant 0 : index
    %56 = vector.load %arg11[%c8_19, %c0_20] : memref<32x128xf32, #tpu.memory_space<vmem>>, vector<16x128xf32>
    %57 = vector.extract_strided_slice %3 {offsets = [1, 0], sizes = [1, 128], strides = [1, 1]} : vector<8x128xf32> to vector<1x128xf32>
    %58 = vector.shape_cast %57 : vector<1x128xf32> to vector<128xf32>
    %59 = vector.shape_cast %58 : vector<128xf32> to vector<1x128xf32>
    %60 = vector.broadcast %59 : vector<1x128xf32> to vector<16x128xf32>
    %61 = arith.mulf %56, %60 : vector<16x128xf32>
    %62 = arith.addf %55, %61 : vector<16x128xf32>
    %c9 = arith.constant 9 : index
    %c0_21 = arith.constant 0 : index
    %63 = vector.load %arg11[%c9, %c0_21] : memref<32x128xf32, #tpu.memory_space<vmem>>, vector<16x128xf32>
    %64 = vector.extract_strided_slice %3 {offsets = [2, 0], sizes = [1, 128], strides = [1, 1]} : vector<8x128xf32> to vector<1x128xf32>
    %65 = vector.shape_cast %64 : vector<1x128xf32> to vector<128xf32>
    %66 = vector.shape_cast %65 : vector<128xf32> to vector<1x128xf32>
    %67 = vector.broadcast %66 : vector<1x128xf32> to vector<16x128xf32>
    %68 = arith.mulf %63, %67 : vector<16x128xf32>
    %69 = arith.addf %62, %68 : vector<16x128xf32>
    %70 = arith.addf %5, %69 : vector<16x128xf32>
    %71 = vector.extract_strided_slice %3 {offsets = [3, 0], sizes = [1, 128], strides = [1, 1]} : vector<8x128xf32> to vector<1x128xf32>
    %72 = vector.shape_cast %71 : vector<1x128xf32> to vector<128xf32>
    %73 = vector.shape_cast %72 : vector<128xf32> to vector<1x128xf32>
    %74 = vector.extract_strided_slice %3 {offsets = [4, 0], sizes = [1, 128], strides = [1, 1]} : vector<8x128xf32> to vector<1x128xf32>
    %75 = vector.shape_cast %74 : vector<1x128xf32> to vector<128xf32>
    %76 = vector.shape_cast %75 : vector<128xf32> to vector<1x128xf32>
    %cst_22 = arith.constant dense<0.000000e+00> : vector<16xf32>
    %77 = vector.multi_reduction <add>, %70, %cst_22 [1] : vector<16x128xf32> to vector<16xf32>
    %78 = vector.shape_cast %77 : vector<16xf32> to vector<16x1xf32>
    %cst_23 = arith.constant 1.280000e+02 : f32
    %79 = vector.broadcast %cst_23 : f32 to vector<16x1xf32>
    %80 = arith.divf %78, %79 : vector<16x1xf32>
    %81 = vector.broadcast %80 : vector<16x1xf32> to vector<16x128xf32>
    %82 = arith.subf %70, %81 : vector<16x128xf32>
    %83 = arith.mulf %82, %82 : vector<16x128xf32>
    %cst_24 = arith.constant dense<0.000000e+00> : vector<16xf32>
    %84 = vector.multi_reduction <add>, %83, %cst_24 [1] : vector<16x128xf32> to vector<16xf32>
    %85 = vector.shape_cast %84 : vector<16xf32> to vector<16x1xf32>
    %cst_25 = arith.constant 1.280000e+02 : f32
    %86 = vector.broadcast %cst_25 : f32 to vector<16x1xf32>
    %87 = arith.divf %85, %86 : vector<16x1xf32>
    %88 = vector.broadcast %80 : vector<16x1xf32> to vector<16x128xf32>
    %89 = arith.subf %70, %88 : vector<16x128xf32>
    %cst_26 = arith.constant 9.99999974E-6 : f32
    %90 = vector.broadcast %cst_26 : f32 to vector<16x1xf32>
    %91 = arith.addf %87, %90 : vector<16x1xf32>
    %92 = math.rsqrt %91 : vector<16x1xf32>
    %93 = vector.broadcast %92 : vector<16x1xf32> to vector<16x128xf32>
    %94 = arith.mulf %89, %93 : vector<16x128xf32>
    %95 = vector.broadcast %73 : vector<1x128xf32> to vector<16x128xf32>
    %96 = arith.mulf %94, %95 : vector<16x128xf32>
    %97 = vector.broadcast %76 : vector<1x128xf32> to vector<16x128xf32>
    %98 = arith.addf %96, %97 : vector<16x128xf32>
    %99 = arith.truncf %98 : vector<16x128xf32> to vector<16x128xbf16>
    %c0_27 = arith.constant 0 : index
    %c0_28 = arith.constant 0 : index
    %100 = vector.load %arg8[%c0_27, %c0_28] : memref<128x256xbf16, #tpu.memory_space<vmem>>, vector<128x256xbf16>
    %cst_29 = arith.constant dense<0.000000e+00> : vector<16x256xf32>
    %101 = tpu.matmul %99, %100, %cst_29 {dimension_numbers = #tpu.dot_dimension_numbers<[1], [0], [0], [1], [0, 0, 1, 1], [], []>} : vector<16x128xbf16>, vector<128x256xbf16>, vector<16x256xf32> -> vector<16x256xf32>
    %c0_30 = arith.constant 0 : index
    %c0_31 = arith.constant 0 : index
    %102 = vector.load %arg7[%c0_30, %c0_31] : memref<1x256xf32, #tpu.memory_space<vmem>>, vector<1x256xf32>
    %103 = vector.broadcast %102 : vector<1x256xf32> to vector<16x256xf32>
    %104 = arith.addf %101, %103 : vector<16x256xf32>
    %cst_32 = arith.constant 0.000000e+00 : f32
    %105 = vector.broadcast %cst_32 : f32 to vector<16x256xf32>
    %106 = arith.maximumf %104, %105 : vector<16x256xf32>
    %107 = arith.truncf %106 : vector<16x256xf32> to vector<16x256xbf16>
    %c0_33 = arith.constant 0 : index
    %c0_34 = arith.constant 0 : index
    %108 = vector.load %arg9[%c0_33, %c0_34] : memref<256x128xbf16, #tpu.memory_space<vmem>>, vector<256x128xbf16>
    %cst_35 = arith.constant dense<0.000000e+00> : vector<16x128xf32>
    %109 = tpu.matmul %107, %108, %cst_35 {dimension_numbers = #tpu.dot_dimension_numbers<[1], [0], [0], [1], [0, 0, 1, 1], [], []>} : vector<16x256xbf16>, vector<256x128xbf16>, vector<16x128xf32> -> vector<16x128xf32>
    %110 = vector.extract_strided_slice %3 {offsets = [5, 0], sizes = [1, 128], strides = [1, 1]} : vector<8x128xf32> to vector<1x128xf32>
    %111 = vector.shape_cast %110 : vector<1x128xf32> to vector<128xf32>
    %112 = vector.shape_cast %111 : vector<128xf32> to vector<1x128xf32>
    %113 = vector.broadcast %112 : vector<1x128xf32> to vector<16x128xf32>
    %114 = arith.addf %109, %113 : vector<16x128xf32>
    %115 = arith.addf %98, %114 : vector<16x128xf32>
    %116 = vector.extract_strided_slice %3 {offsets = [6, 0], sizes = [1, 128], strides = [1, 1]} : vector<8x128xf32> to vector<1x128xf32>
    %117 = vector.shape_cast %116 : vector<1x128xf32> to vector<128xf32>
    %118 = vector.shape_cast %117 : vector<128xf32> to vector<1x128xf32>
    %119 = vector.extract_strided_slice %3 {offsets = [7, 0], sizes = [1, 128], strides = [1, 1]} : vector<8x128xf32> to vector<1x128xf32>
    %120 = vector.shape_cast %119 : vector<1x128xf32> to vector<128xf32>
    %121 = vector.shape_cast %120 : vector<128xf32> to vector<1x128xf32>
    %cst_36 = arith.constant dense<0.000000e+00> : vector<16xf32>
    %122 = vector.multi_reduction <add>, %115, %cst_36 [1] : vector<16x128xf32> to vector<16xf32>
    %123 = vector.shape_cast %122 : vector<16xf32> to vector<16x1xf32>
    %cst_37 = arith.constant 1.280000e+02 : f32
    %124 = vector.broadcast %cst_37 : f32 to vector<16x1xf32>
    %125 = arith.divf %123, %124 : vector<16x1xf32>
    %126 = vector.broadcast %125 : vector<16x1xf32> to vector<16x128xf32>
    %127 = arith.subf %115, %126 : vector<16x128xf32>
    %128 = arith.mulf %127, %127 : vector<16x128xf32>
    %cst_38 = arith.constant dense<0.000000e+00> : vector<16xf32>
    %129 = vector.multi_reduction <add>, %128, %cst_38 [1] : vector<16x128xf32> to vector<16xf32>
    %130 = vector.shape_cast %129 : vector<16xf32> to vector<16x1xf32>
    %cst_39 = arith.constant 1.280000e+02 : f32
    %131 = vector.broadcast %cst_39 : f32 to vector<16x1xf32>
    %132 = arith.divf %130, %131 : vector<16x1xf32>
    %133 = vector.broadcast %125 : vector<16x1xf32> to vector<16x128xf32>
    %134 = arith.subf %115, %133 : vector<16x128xf32>
    %cst_40 = arith.constant 9.99999974E-6 : f32
    %135 = vector.broadcast %cst_40 : f32 to vector<16x1xf32>
    %136 = arith.addf %132, %135 : vector<16x1xf32>
    %137 = math.rsqrt %136 : vector<16x1xf32>
    %138 = vector.broadcast %137 : vector<16x1xf32> to vector<16x128xf32>
    %139 = arith.mulf %134, %138 : vector<16x128xf32>
    %140 = vector.broadcast %118 : vector<1x128xf32> to vector<16x128xf32>
    %141 = arith.mulf %139, %140 : vector<16x128xf32>
    %142 = vector.broadcast %121 : vector<1x128xf32> to vector<16x128xf32>
    %143 = arith.addf %141, %142 : vector<16x128xf32>
    %c0_41 = arith.constant 0 : index
    %c0_42 = arith.constant 0 : index
    %c0_43 = arith.constant 0 : index
    %144 = vector.load %arg10[%c0_41, %c0_42, %c0_43] : memref<1x16x128xf32, #tpu.memory_space<vmem>>, vector<1x16x128xf32>
    %145 = vector.shape_cast %144 : vector<1x16x128xf32> to vector<16x128xf32>
    %146 = vector.shape_cast %143 : vector<16x128xf32> to vector<1x16x128xf32>
    tpu.vector_store %arg10[%c0_41, %c0_42, %c0_43], %146 {strides = array<i32>} : memref<1x16x128xf32, #tpu.memory_space<vmem>>, vector<1x16x128xf32>,
    return
  }
  func.func @transform_0(%arg0: i32, %arg1: i32, %arg2: memref<2xi32, #tpu.memory_space<smem>>) -> (i32, i32, i32) {
    %c0_i32 = arith.constant 0 : i32
    %c0_i32_0 = arith.constant 0 : i32
    return %arg0, %arg1, %c0_i32 : i32, i32, i32
  }
  func.func @transform_1(%arg0: i32, %arg1: i32, %arg2: memref<2xi32, #tpu.memory_space<smem>>) -> (i32, i32, i32) {
    %c2_i32 = arith.constant 2 : i32
    %0 = arith.muli %arg1, %c2_i32 : i32
    %c1_i32 = arith.constant 1 : i32
    %1 = arith.subi %0, %c1_i32 : i32
    %c0_i32 = arith.constant 0 : i32
    %2 = arith.maxsi %1, %c0_i32 : i32
    %c0_i32_0 = arith.constant 0 : i32
    %c0_i32_1 = arith.constant 0 : i32
    return %arg0, %2, %c0_i32_0 : i32, i32, i32
  }
  func.func @transform_2(%arg0: i32, %arg1: i32, %arg2: memref<2xi32, #tpu.memory_space<smem>>) -> (i32, i32, i32) {
    %c2_i32 = arith.constant 2 : i32
    %0 = arith.muli %arg1, %c2_i32 : i32
    %c2_i32_0 = arith.constant 2 : i32
    %1 = arith.addi %0, %c2_i32_0 : i32
    %c3_i32 = arith.constant 3 : i32
    %2 = arith.minsi %1, %c3_i32 : i32
    %c0_i32 = arith.constant 0 : i32
    %c0_i32_1 = arith.constant 0 : i32
    return %arg0, %2, %c0_i32 : i32, i32, i32
  }
  func.func @transform_3(%arg0: i32, %arg1: i32, %arg2: memref<2xi32, #tpu.memory_space<smem>>) -> (i32, i32) {
    %c0_i32 = arith.constant 0 : i32
    %c0_i32_0 = arith.constant 0 : i32
    %c0_i32_1 = arith.constant 0 : i32
    return %c0_i32, %c0_i32_0 : i32, i32
  }
  func.func @transform_4(%arg0: i32, %arg1: i32, %arg2: memref<2xi32, #tpu.memory_space<smem>>) -> (i32, i32) {
    %c0_i32 = arith.constant 0 : i32
    %c0_i32_0 = arith.constant 0 : i32
    %c0_i32_1 = arith.constant 0 : i32
    return %c0_i32, %c0_i32_0 : i32, i32
  }
  func.func @transform_5(%arg0: i32, %arg1: i32, %arg2: memref<2xi32, #tpu.memory_space<smem>>) -> (i32, i32) {
    %c0_i32 = arith.constant 0 : i32
    %c0_i32_0 = arith.constant 0 : i32
    %c0_i32_1 = arith.constant 0 : i32
    return %c0_i32, %c0_i32_0 : i32, i32
  }
  func.func @transform_6(%arg0: i32, %arg1: i32, %arg2: memref<2xi32, #tpu.memory_space<smem>>) -> (i32, i32) {
    %c0_i32 = arith.constant 0 : i32
    %c0_i32_0 = arith.constant 0 : i32
    %c0_i32_1 = arith.constant 0 : i32
    return %c0_i32, %c0_i32_0 : i32, i32
  }
  func.func @transform_7(%arg0: i32, %arg1: i32, %arg2: memref<2xi32, #tpu.memory_space<smem>>) -> (i32, i32, i32) {
    %c0_i32 = arith.constant 0 : i32
    %c0_i32_0 = arith.constant 0 : i32
    return %arg0, %arg1, %c0_i32 : i32, i32, i32
  }
}

</mosaic_0001>

<bundles_post_ra>
// kernel: tpu_custom_call.1
= control target key start
LH: loop header
LB: loop body
LE: loop exit
PB: predicated region body
PF: predicated region fallthrough
CT: control target
= control target key end

     0   :  { %s2370_s0 = inlined_call_operand.hbm [shape: s32[2], index: 0, kind: input, shape index: {}]   ;;  %s2371_s1 = inlined_call_operand.hbm [shape: f32[2,32,128], index: 1, kind: input, shape index: {}]   ;;  %s2372_s2 = inlined_call_operand.hbm [shape: f32[2,32,128], index: 2, kind: input, shape index: {}]   ;;  %s2373_s3 = inlined_call_operand.hbm [shape: f32[2,32,128], index: 3, kind: input, shape index: {}]   ;;  %s2374_s4 = inlined_call_operand.vmem [shape: f32[8,128], index: 4, kind: input, shape index: {}]   ;;  %s2375_s5 = inlined_call_operand.vmem [shape: f32[1,256], index: 5, kind: input, shape index: {}]   ;;  %s2376_s6 = inlined_call_operand.hbm [shape: bf16[128,256], index: 6, kind: input, shape index: {}]   ;;  %s2377_s7 = inlined_call_operand.hbm [shape: bf16[256,128], index: 7, kind: input, shape index: {}]   ;;  %s2378_s8 = inlined_call_operand.hbm [shape: f32[2,32,128], index: 8, kind: output, shape index: {}]  }
   0x1   :  { %2405 = sst [smem:[#allocation37_spill]] %s2371_s1  ;;  %s1422_s29 = scalar_lea.hbm %s2370_s0, 16 }
   0x2   :  { %2406 = sst [smem:[#allocation38_spill]] %s2372_s2  ;;  %p1423_p0 = scmp.ne.s32.totalorder %s2370_s0, %s1422_s29 }
   0x3   :  { %2407 = sst [smem:[#allocation39_spill]] %s2373_s3  ;;  %p1426_p1 = scmp.lt.u32.totalorder %s1422_s29, %s2370_s0 }
   0x4   :  { %2408 = sst [smem:[#allocation40_spill]] %s2374_s4 }
   0x5   :  { %2409 = sst [smem:[#allocation41_spill]] %s2375_s5  ;;  %p1428_p2 = pnand %p1426_p1, %p1423_p0 }
   0x6   :  { %2410 = sst [smem:[#allocation42_spill]] %s2376_s6 }
   0x7   :  { %2411 = sst [smem:[#allocation43_spill]] %s2377_s7 }
   0x8   :  { %2412 = sst [smem:[#allocation44_spill]] %s2378_s8 }
   0x9   :  { %1431 = shalt.err (!%p1428_p2)  }
   0xa   :  { %s1740_s12 = smov [#allocation4]  }
   0xb   :  { %14 = dma.hbm_to_smem %s2370_s0, 16, %s1740_s12, [#allocation3] }
   0xc   :  { %1662 = dma.done.wait [#allocation3], 16 }
   0xd   :  { %1663 = vsyncadd [#allocation3], 4294967280 }
   0xe   :  { %16 = sfence }
   0xf   :  { %17 = vsyncpa [#allocation6], 0 }
  0x10   :  { %19 = vsyncpa [#allocation6 + $0x1], 0 }
  0x11   :  { %20 = vsyncpa [#allocation9], 0 }
  0x12   :  { %22 = vsyncpa [#allocation9 + $0x1], 0 }
  0x13   :  { %23 = vsyncpa [#allocation12], 0 }
  0x14   :  { %24 = vsyncpa [#allocation7], 0 }
  0x15   :  { %26 = vsyncpa [#allocation7 + $0x1], 0  ;;  %s1811_s15 = smov 0   ;;  %s1813_s16 = smov 0  }
  0x16   :  { %s1815_s17 = smov 0   ;;  %s1817_s18 = smov 0  }
  0x17   :  { %s1819_s19 = smov 0   ;;  %s1821_s0 = smov 0  }
  0x18   :  { %s1823_s20 = smov 0   ;;  %s1825_s21 = smov 0  }
  0x19   :  { %s1827_s22 = smov 0   ;;  %s1829_s23 = smov 0  }
  0x1a   :  { %s1831_s24 = smov 0   ;;  %s1833_s25 = smov 0  }
  0x1b   :  { %s1835_s26 = smov 0   ;;  %s1837_s27 = smov 0  }
  0x1c LB: > { %2413 = sst [smem:[#allocation21_spill]] %s1686_s15  ;;  %s1882_s28 = sadd.s32 4294967295, %s1738_s27   ;;  %s1738_s27 = sphi %s1837_s27, %s32_s27   ;;  %s1734_s26 = sphi %s1835_s26, %s2489_s26   ;;  %s1730_s25 = sphi %s1833_s25, %s2488_s25   ;;  %s1726_s24 = sphi %s1831_s24, %s2487_s24   ;;  %s1722_s23 = sphi %s1829_s23, %s2486_s23   ;;  %s1718_s22 = sphi %s1827_s22, %s2485_s22   ;;  %s1714_s21 = sphi %s1825_s21, %s2497_s21   ;;  %s1710_s20 = sphi %s1823_s20, %s2496_s20   ;;  %s1706_s0 = sphi %s1821_s0, %s2495_s0   ;;  %s1702_s19 = sphi %s1819_s19, %s2494_s19   ;;  %s1698_s18 = sphi %s1817_s18, %s2481_s18   ;;  %s1694_s17 = sphi %s1815_s17, %s2493_s17   ;;  %s1690_s16 = sphi %s1813_s16, %s2492_s16   ;;  %s1686_s15 = sphi %s1811_s15, %s2491_s15  }
  0x1d   : > { %2414 = sst [smem:[#allocation22_spill]] %s1702_s19  ;;  %p1123_p3 = scmp.ge.s32.totalorder %s1738_s27, 1 }
  0x1e   : > { %2415 = sst [smem:[#allocation23_spill]] %s1706_s0  ;;  %p2380_p4 = scmp.eq.s32.totalorder %s1882_s28, 0 }
  0x1f   : > { %2416 = sst [smem:[#allocation24_spill]] %s1718_s22  ;;  %p261_p6 = scmp.lt.s32.totalorder %s1738_s27, 5 }
  0x20   : > { %2417 = sst [smem:[#allocation25_spill]] %s1722_s23  ;;  %s1741_s30 = smov [#allocation11]  }
  0x21   : > { %2418 = sst [smem:[#allocation26_spill]] %s1726_s24  ;;  %p1888_p7 = pnand %p1123_p3, %p261_p6 }
  0x22   : > { %2419 = sst [smem:[#allocation27_spill]] %s1730_s25  ;;  %s279_s9 = sshll.u32 %s1741_s30, 4  ;;  %s280_s9 = int_to_ptr.vmem [resolvable:$true] %s279_s9 }
  0x23   : > { %2420 = sst [smem:[#allocation28_spill]] %s1734_s26  ;;  %p1225_p8 = pneg %p1888_p7 }
  0x24   : > { %s2421_s29 = scalar_select %p1888_p7, 1, 0 }
  0x25   : > { %p1896_p9 = pnand %p1225_p8, %p2380_p4  ;;  %s2424_s6 = sld [smem:[#allocation42_spill]] }
  0x26   : > { %2422 = sst [smem:[#allocation29_spill]] %s2421_s29 }
  0x27   : > { %p2398_p11 = pneg %p1896_p9 }
  0x2b   : > { %s1432_s13 = scalar_lea.hbm %s2424_s6, 2048 }
  0x2c   : > { %p1433_p10 = scmp.ne.s32.totalorder %s2424_s6, %s1432_s13  ;;  %p1439_p0 = scmp.lt.u32.totalorder %s1432_s13, %s2424_s6 }
  0x2e   : > { %p1435_p12 = pnand %p2398_p11, %p1433_p10 }
  0x30   : > { %p1436_p13 = pneg %p1435_p12 }
  0x32   : > { %p1441_p1 = pnand %p1439_p0, %p1436_p13 }
  0x34   : > { %1444 = shalt.err (!%p1441_p1)
}
  0x35   : > { %s1445_s11 = scalar_lea.vmem %s280_s9, 2048  ;;  %p1453_p8 = scmp.lt.s32.totalorder %s280_s9, %s280_s9 }
  0x36   : > { %p1446_p2 = scmp.ne.s32.totalorder %s280_s9, %s1445_s11  ;;  %p1454_p5 = scmp.lt.s32.totalorder %s1445_s11, %s1445_s11 }
  0x38   : > { %p1448_p3 = pnand %p1446_p2, %p2398_p11  ;;  %p1455_p4 = por %p1454_p5, %p1453_p8 }
  0x3a   : > { %p1449_p6 = pneg %p1448_p3 }
  0x3c   : > { %p1456_p7 = pnand %p1455_p4, %p1449_p6 }
  0x3e   : > { %1459 = shalt.err (!%p1456_p7)
}
  0x3f   : > { %s2383_s8 = smov 128   ;;  %s2384_s5 = smov 8  }
  0x40   : > { %1228 = dma.hbm_to_vmem [thread:$0]  (!%p1896_p9), %s2424_s6, 2048, %s280_s9, [#allocation12], %s2383_s8, %s2383_s8, %s2384_s5  }
  0x41   : > { %s41_s14 = sadd.s32 1, %s1730_s25  ;;  %s44_s30 = sadd.s32 1, %s1734_s26 }
  0x42   : > { %p42_p4 = scmp.ge.s32.totalorder %s41_s14, 2  ;;  %p2397_p5 = scmp.eq.s32.totalorder %s1738_s27, 0 }
  0x43   : > { %s1929_s11 = sshll.u32 %s1730_s25, 1  ;;  %s89_s4 = sadd.s32 1, %s1706_s0 }
  0x44   : > { %s2499_s14 = smov (%p42_p4, %s41_s14), 0  ;;  %s2501_s30 = smov (!%p42_p4, %s44_s30), %s1734_s26 }
  0x45   : > { %2425 = sst [smem:[#allocation30_spill]] %s2499_s14  ;;  %s49_s24 = ssub.s32 %s1730_s25, %s2499_s14 }
  0x46   : > { %s1118_s12 = sadd.s32 4294967295, %s1929_s11  ;;  %p46_p7 = scmp.ge.s32.totalorder %s2501_s30, 2 }
  0x47   : > { %p78_p10 = scmp.gt.s32.totalorder %s1118_s12, 0  ;;  %s1119_s9 = sshll.u32 %s2499_s14, 1 }
  0x48   : > { %p96_p12 = scmp.ne.s32.totalorder %s1706_s0, %s1702_s19  ;;  %s2503_s30 = smov (%p46_p7, %s2501_s30), 0 }
  0x49   : > { %2426 = sst [smem:[#allocation31_spill]] %s2503_s30  ;;  %s2505_s12 = smov (!%p78_p10, %s1118_s12), 0 }
  0x4a   : > { %s1945_s13 = ssub.s32 %s1734_s26, %s2503_s30  ;;  %s1120_s8 = sadd.s32 4294967295, %s1119_s9 }
  0x4b   : > { %2427 = sst [smem:[#allocation32_spill]] %s1945_s13  ;;  %s1948_s5 = sor.u32 %s49_s24, %s1945_s13 }
  0x4c   : > { %p82_p13 = scmp.gt.s32.totalorder %s1120_s8, 0  ;;  %p1953_p1 = por %p96_p12, %p2397_p5 }
  0x4d   : > { %p102_p2 = scmp.ne.s32.totalorder %s1702_s19, %s1698_s18  ;;  %s1959_s30 = sadd.s32 2, %s1119_s9 }
  0x4e   : > { %s2507_s8 = smov (!%p82_p13, %s1120_s8), 0  ;;  %2429 = sst [smem:[#allocation33_spill]] %s1959_s30 }
  0x4f   : > { %s85_s14 = ssub.s32 %s2505_s12, %s2507_s8  ;;  %p2430_p6 = scmp.eq.s32.totalorder %s1882_s28, 0 }
  0x50   : > { %s86_s24 = sor.u32 %s85_s14, %s1945_s13  ;;  %p2396_p7 = scmp.lt.s32.totalorder %s1738_s27, 4 }
  0x51   : > { %p1965_p8 = por %p102_p2, %p2430_p6  ;;  %p87_p4 = scmp.eq.s32.totalorder %s86_s24, 0 }
  0x52   : > { %s1971_s23 = sshll.u32 %s1734_s26, 2  ;;  %s329_s18 = sand.u32 1, %s1738_s27  }
  0x53   : > { %s2431_s25 = scalar_select %p1965_p8, 1, 0 }
  0x54   : > { %s1975_s9 = scalar_select %p87_p4, %s1706_s0, %s89_s4  }
  0x55   : > { %s316_s19 = sadd.s32 %s1971_s23, %s1929_s11  ;;  %s331_s8 = sand.u32 1, %s1706_s0  }
  0x56   : > { %2432 = sst [smem:[#allocation34_spill]] %s1975_s9  ;;  %s342_s29 = sadd.s32 %s1971_s23, %s2505_s12 }
  0x57   : > { %s1131_s3 = sshll.u32 %s331_s8, 3  ;;  %s1135_s15 = sshll.u32 %s342_s29, 7 }
  0x58   : > { %s2433_s2 = sld [smem:[#allocation38_spill]]  ;;  %s333_s24 = scalar_lea.vmem [#allocation8], %s1131_s3 }
  0x59   : > { %s346_s26 = sshll.u32 %s333_s24, 4  ;;  %p1990_p10 = pnand %p2396_p7, %p1953_p1  ;;  %s1994_s26 = int_to_ptr.vmem [resolvable:$true] %s346_s26 }
  0x5a   : > { %s1744_s29 = smov [#allocation13]  }
  0x5b   : > { %s1996_s12 = sshll.u32 %s1744_s29, 4  ;;  %p1462_p13 = pneg %p1990_p10  ;;  %s293_s12 = int_to_ptr.vmem [resolvable:$true] %s1996_s12 }
  0x5e   : > { %s1984_s30 = scalar_lea.hbm %s2433_s2, %s1135_s15  ;;  %s1998_s15 = scalar_lea.sflag [#allocation9], %s329_s18 }
  0x5f   : > { %s1460_s13 = scalar_lea.hbm %s1984_s30, 128  ;;  %s1465_s8 = scalar_lea.hbm %s2433_s2, 1024 }
  0x60   : > { %p1461_p12 = scmp.ne.s32.totalorder %s1984_s30, %s1460_s13  ;;  %p1466_p6 = scmp.lt.u32.totalorder %s1984_s30, %s2433_s2 }
  0x61   : > { %p1467_p4 = scmp.lt.u32.totalorder %s1465_s8, %s1460_s13  ;;  %p1469_p7 = scmp.lt.u32.totalorder %s1460_s13, %s1984_s30 }
  0x62   : > { %p1463_p2 = pnand %p1462_p13, %p1461_p12 }
  0x63   : > { %p1468_p3 = por %p1467_p4, %p1466_p6 }
  0x64   : > { %p1464_p1 = pneg %p1463_p2 }
  0x65   : > { %p1470_p5 = por %p1469_p7, %p1468_p3 }
  0x67   : > { %p1471_p0 = pnand %p1470_p5, %p1464_p1 }
  0x69   : > { %1474 = shalt.err (!%p1471_p0)
}
  0x6a   : > { %s1475_s18 = scalar_lea.vmem %s1994_s26, 128  ;;  %s1745_s29 = smov [#allocation8]  }
  0x6b   : > { %p1476_p12 = scmp.ne.s32.totalorder %s1994_s26, %s1475_s18  ;;  %s1480_s3 = sshll.u32 %s1745_s29, 4  ;;  %s1481_s3 = int_to_ptr.vmem [resolvable:$false] %s1480_s3 }
  0x6c   : > { %s1482_s6 = scalar_lea.vmem %s1481_s3, 256  ;;  %p1483_p8 = scmp.lt.s32.totalorder %s1994_s26, %s1481_s3 }
  0x6d   : > { %p1478_p2 = pnand %p1476_p12, %p1462_p13  ;;  %p1484_p6 = scmp.lt.s32.totalorder %s1482_s6, %s1475_s18 }
  0x6f   : > { %p1479_p11 = pneg %p1478_p2  ;;  %p1485_p4 = por %p1484_p6, %p1483_p8 }
  0x71   : > { %p1486_p3 = pnand %p1485_p4, %p1479_p11 }
  0x73   : > { %1489 = shalt.err (!%p1486_p3)
}
  0x74   : > { %1238 = dma.hbm_to_vmem [thread:$0]  (!%p1990_p10), %s1984_s30, 128, %s1994_s26, %s1998_s15  }
  0x75   : > { %s2435_s7 = sld [smem:[#allocation43_spill]]  ;;  %p2436_p11 = pneg %p1896_p9 }
  0x7b   : > { %s1490_s14 = scalar_lea.hbm %s2435_s7, 2048 }
  0x7c   : > { %p1491_p5 = scmp.ne.s32.totalorder %s2435_s7, %s1490_s14  ;;  %p1497_p7 = scmp.lt.u32.totalorder %s1490_s14, %s2435_s7 }
  0x7e   : > { %p1493_p0 = pnand %p1491_p5, %p2436_p11 }
  0x80   : > { %p1494_p8 = pneg %p1493_p0 }
  0x82   : > { %p1499_p13 = pnand %p1497_p7, %p1494_p8 }
  0x84   : > { %1502 = shalt.err (!%p1499_p13)
}
  0x85   : > { %s1503_s26 = scalar_lea.vmem %s293_s12, 2048  ;;  %p2437_p1 = pmov %p2436_p11 }
  0x86   : > { %p1504_p10 = scmp.ne.s32.totalorder %s293_s12, %s1503_s26  ;;  %p1511_p6 = scmp.lt.s32.totalorder %s293_s12, %s293_s12 }
  0x87   : > { %p1512_p4 = scmp.lt.s32.totalorder %s1503_s26, %s1503_s26 }
  0x88   : > { %p1506_p12 = pnand %p1504_p10, %p2437_p1 }
  0x89   : > { %p1513_p3 = por %p1512_p4, %p1511_p6 }
  0x8a   : > { %p1507_p2 = pneg %p1506_p12 }
  0x8c   : > { %p1514_p5 = pnand %p1513_p3, %p1507_p2 }
  0x8e   : > { %1517 = shalt.err (!%p1514_p5)
}
  0x8f   : > { %s1746_s30 = smov 64   ;;  %s1747_s3 = smov 4  }
  0x90   : > { %1231 = dma.hbm_to_vmem [thread:$0]  (!%p1896_p9), %s2435_s7, 2048, %s293_s12, [#allocation12], %s1746_s30, %s1746_s30, %s1747_s3  }
  0x91   : > { %s1116_s8 = sadd.s32 4294967294, %s1738_s27   ;;  %s53_s14 = sadd.s32 1, %s1718_s22 }
  0x92   : > { %p60_p11 = scmp.ne.s32.totalorder %s1718_s22, %s1714_s21  ;;  %p2438_p0 = scmp.eq.s32.totalorder %s1948_s5, 0 }
  0x93   : > { %p2440_p8 = scmp.eq.s32.totalorder %s1738_s27, 0  ;;  %p66_p13 = scmp.ne.s32.totalorder %s1714_s21, %s1710_s20 }
  0x94   : > { %s2054_s24 = scalar_select %p2438_p0, %s1718_s22, %s53_s14  }
  0x95   : > { %p62_p7 = por %p2440_p8, %p60_p11  ;;  %p2441_p10 = scmp.eq.s32.totalorder %s1882_s28, 3 }
  0x96   : > { %2439 = sst [smem:[#allocation35_spill]] %s2054_s24  ;;  %p254_p12 = scmp.eq.s32.totalorder %s1116_s8, 3 }
  0x97   : > { %p2062_p1 = por %p2441_p10, %p60_p11  ;;  %p2443_p2 = scmp.eq.s32.totalorder %s1882_s28, 0 }
  0x98   : > { %s306_s12 = sand.u32 1, %s1718_s22   ;;  %p2073_p9 = por %p254_p12, %p66_p13 }
  0x99   : > { %s2442_s29 = scalar_select %p2062_p1, 1, 0 }
  0x9a   : > { %p2068_p6 = por %p2443_p2, %p66_p13  ;;  %s1127_s5 = sshll.u32 %s306_s12, 4 }
  0x9b   : > { %s2445_s4 = scalar_select %p2073_p9, 1, 0 }
  0x9c   : > { %s1130_s18 = sshll.u32 %s316_s19, 7  ;;  %s2447_s1 = sld [smem:[#allocation37_spill]] }
  0x9d   : > { %2446 = sst [smem:[#allocation36_spill]] %s2445_s4  ;;  %s310_s6 = scalar_lea.vmem [#allocation5], %s1127_s5 }
  0x9e   : > { %s319_s13 = sshll.u32 %s310_s6, 4  ;;  %p2448_p4 = scmp.lt.s32.totalorder %s1738_s27, 4  ;;  %s2091_s13 = int_to_ptr.vmem [resolvable:$true] %s319_s13 }
  0x9f   : > { %s2093_s19 = scalar_lea.sflag [#allocation6], %s306_s12 }
  0xa0   : > { %p2087_p3 = pnand %p2448_p4, %p62_p7 }
  0xa2   : > { %s2083_s3 = scalar_lea.hbm %s2447_s1, %s1130_s18  ;;  %p1520_p11 = pneg %p2087_p3 }
  0xa3   : > { %s1518_s14 = scalar_lea.hbm %s2083_s3, 256  ;;  %s1523_s26 = scalar_lea.hbm %s2447_s1, 1024 }
  0xa4   : > { %p1519_p5 = scmp.ne.s32.totalorder %s2083_s3, %s1518_s14  ;;  %p1524_p7 = scmp.lt.u32.totalorder %s2083_s3, %s2447_s1 }
  0xa5   : > { %p1525_p13 = scmp.lt.u32.totalorder %s1523_s26, %s1518_s14  ;;  %p1527_p12 = scmp.lt.u32.totalorder %s1518_s14, %s2083_s3 }
  0xa6   : > { %p1521_p0 = pnand %p1520_p11, %p1519_p5 }
  0xa7   : > { %p1526_p10 = por %p1525_p13, %p1524_p7 }
  0xa8   : > { %p1522_p8 = pneg %p1521_p0 }
  0xa9   : > { %p1528_p2 = por %p1527_p12, %p1526_p10 }
  0xab   : > { %p1529_p4 = pnand %p1528_p2, %p1522_p8 }
  0xad   : > { %1532 = shalt.err (!%p1529_p4)
}
  0xae   : > { %s1533_s12 = scalar_lea.vmem %s2091_s13, 256  ;;  %s1748_s5 = smov [#allocation5]  }
  0xaf   : > { %p1534_p5 = scmp.ne.s32.totalorder %s2091_s13, %s1533_s12  ;;  %s1538_s18 = sshll.u32 %s1748_s5, 4  ;;  %s1539_s18 = int_to_ptr.vmem [resolvable:$false] %s1538_s18 }
  0xb0   : > { %s1540_s30 = scalar_lea.vmem %s1539_s18, 512  ;;  %p1541_p1 = scmp.lt.s32.totalorder %s2091_s13, %s1539_s18 }
  0xb1   : > { %p1536_p0 = pnand %p1534_p5, %p1520_p11  ;;  %p1542_p7 = scmp.lt.s32.totalorder %s1540_s30, %s1533_s12 }
  0xb3   : > { %p1537_p9 = pneg %p1536_p0  ;;  %p1543_p13 = por %p1542_p7, %p1541_p1 }
  0xb5   : > { %p1544_p10 = pnand %p1543_p13, %p1537_p9 }
  0xb7   : > { %1547 = shalt.err (!%p1544_p10)
}
  0xb8   : > { %s2450_s14 = smov 8   ;;  %s2451_s26 = smov 128  }
  0xb9   : > { %s2452_s6 = sld [smem:[#allocation33_spill]]  ;;  %s2453_s5 = sld [smem:[#allocation21_spill]] }
  0xba   : > { %s2454_s12 = sld [smem:[#allocation32_spill]]  ;;  %s113_s8 = sadd.s32 2, %s1929_s11 }
  0xbb   : > { %1235 = dma.hbm_to_vmem [thread:$0]  (!%p2087_p3), %s2083_s3, 256, %s2091_s13, %s2093_s19, %s2451_s26, %s2451_s26, %s2450_s14  }
  0xbc   : > { %s125_s18 = sadd.s32 1, %s1694_s17  ;;  %p114_p1 = scmp.lt.s32.totalorder %s113_s8, 3 }
  0xbd   : > { %p132_p9 = scmp.ne.s32.totalorder %s1694_s17, %s1690_s16  ;;  %p2456_p8 = scmp.eq.s32.totalorder %s1738_s27, 0 }
  0xbe   : > { %s2511_s8 = smov (!%p114_p1, %s113_s8), 3  ;;  %s355_s2 = sand.u32 1, %s1694_s17  }
  0xbf   : > { %p2455_p11 = scmp.lt.s32.totalorder %s2452_s6, 3  ;;  %p2133_p12 = por %p132_p9, %p2456_p8 }
  0xc0   : > { %p138_p2 = scmp.ne.s32.totalorder %s1690_s16, %s2453_s5  ;;  %p2458_p3 = scmp.eq.s32.totalorder %s1882_s28, 0 }
  0xc1   : > { %s2509_s6 = smov (!%p2455_p11, %s2452_s6), 3  ;;  %s1136_s3 = sshll.u32 %s355_s2, 3 }
  0xc2   : > { %s121_s1 = ssub.s32 %s2511_s8, %s2509_s6  ;;  %p2143_p4 = por %p138_p2, %p2458_p3 }
  0xc3   : > { %s122_s7 = sor.u32 %s121_s1, %s2454_s12  ;;  %s366_s13 = sadd.s32 %s1971_s23, %s2511_s8 }
  0xc4   : > { %s2459_s11 = scalar_select %p2143_p4, 1, 0 }
  0xc5   : > { %p123_p5 = scmp.eq.s32.totalorder %s122_s7, 0  ;;  %s1139_s14 = sshll.u32 %s366_s13, 7 }
  0xc6   : > { %s357_s26 = scalar_lea.vmem [#allocation10], %s1136_s3  ;;  %s2460_s0 = sld [smem:[#allocation39_spill]] }
  0xc7   : > { %s2149_s19 = scalar_select %p123_p5, %s1694_s17, %s125_s18  }
  0xc8   : > { %s370_s24 = sshll.u32 %s357_s26, 4  ;;  %p2462_p0 = scmp.lt.s32.totalorder %s1738_s27, 4  ;;  %s2156_s24 = int_to_ptr.vmem [resolvable:$true] %s370_s24 }
  0xca   : > { %p2162_p7 = pnand %p2462_p0, %p2133_p12 }
  0xcc   : > { %s2461_s4 = smov %s2460_s0  ;;  %s2154_s5 = scalar_lea.hbm %s2460_s0, %s1139_s14 }
  0xcd   : > { %s1548_s2 = scalar_lea.hbm %s2154_s5, 128  ;;  %p1550_p10 = pneg %p2162_p7 }
  0xce   : > { %p1549_p13 = scmp.ne.s32.totalorder %s2154_s5, %s1548_s2  ;;  %s1553_s22 = scalar_lea.hbm %s2461_s4, 1024 }
  0xcf   : > { %p1554_p11 = scmp.lt.u32.totalorder %s2154_s5, %s2461_s4  ;;  %p1555_p8 = scmp.lt.u32.totalorder %s1553_s22, %s1548_s2 }
  0xd0   : > { %p1551_p1 = pnand %p1550_p10, %p1549_p13  ;;  %p1557_p2 = scmp.lt.u32.totalorder %s1548_s2, %s2154_s5 }
  0xd1   : > { %p1556_p12 = por %p1555_p8, %p1554_p11 }
  0xd2   : > { %p1552_p9 = pneg %p1551_p1 }
  0xd3   : > { %p1558_p3 = por %p1557_p2, %p1556_p12 }
  0xd5   : > { %p1559_p5 = pnand %p1558_p3, %p1552_p9 }
  0xd7   : > { %1562 = shalt.err (!%p1559_p5)
}
  0xd8   : > { %s1563_s6 = scalar_lea.vmem %s2156_s24, 128  ;;  %s1749_s12 = smov [#allocation10]  }
  0xd9   : > { %p1564_p0 = scmp.ne.s32.totalorder %s2156_s24, %s1563_s6  ;;  %s1568_s8 = sshll.u32 %s1749_s12, 4  ;;  %s1569_s8 = int_to_ptr.vmem [resolvable:$false] %s1568_s8 }
  0xda   : > { %s1570_s18 = scalar_lea.vmem %s1569_s8, 256  ;;  %p1571_p4 = scmp.lt.s32.totalorder %s2156_s24, %s1569_s8 }
  0xdb   : > { %p1566_p13 = pnand %p1564_p0, %p1550_p10  ;;  %p1572_p11 = scmp.lt.s32.totalorder %s1570_s18, %s1563_s6 }
  0xdd   : > { %p1567_p1 = pneg %p1566_p13  ;;  %p1573_p8 = por %p1572_p11, %p1571_p4 }
  0xdf   : > { %p1574_p12 = pnand %p1573_p8, %p1567_p1 }
  0xe1   : > { %1577 = shalt.err (!%p1574_p12)
}
  0xe2   : > { %1241 = dma.hbm_to_vmem [thread:$0]  (!%p2162_p7), %s2154_s5, 128, %s2156_s24, %s1998_s15  }
  0xe3   : > { %s2464_s30 = sld [smem:[#allocation29_spill]] }
  0xe9   : > { %p2465_p9 = scmp.ne.s32.totalorder %s2464_s30, 0 }
  0xea   : > { %s2195_s3 = sand.u32 (!%p2465_p9), 1, %s1714_s21  }
  0xeb   : > { %379 = sbr.rel (%p2465_p9) target bundleno = 1378 (0x562), region = 48  ;;  %s1141_s13 = sshll.u32 (!%p2465_p9), %s2195_s3, 4 }
  0xec   : > { %s382_s14 = scalar_lea.sflag (!%p2465_p9), [#allocation6], %s2195_s3  ;;  %s2201_s26 = scalar_lea.vmem (!%p2465_p9), [#allocation5], %s1141_s13 }
  0xf2   : > { %1665 = dma.done.wait (%p2068_p6), %s382_s14, 256  }
  0xf3   : > { %1667 = vsyncadd (%p2068_p6), %s382_s14, 4294967040  ;;  %s2466_s15 = sld [smem:[#allocation22_spill]]  ;;  %s390_s24 = sand.u32 1, %s1882_s28  }
  0xf4   : > { %s391_s2 = scalar_lea.sflag [#allocation9], %s390_s24  ;;  %p2467_p4 = scmp.ne.s32.totalorder %s2431_s25, 0 }
  0xf9   : > { %s392_s5 = sand.u32 1, %s2466_s15  }
  0xfa   : > { %s2209_s1 = sshll.u32 %s392_s5, 3 }
  0xfb   : > { %s394_s7 = scalar_lea.vmem [#allocation8], %s2209_s1 }
  0xfc   : > { %1669 = dma.done.wait (%p2467_p4), %s391_s2, 128  }
  0xfd   : > { %1671 = vsyncadd (%p2467_p4), %s391_s2, 4294967168  ;;  %s401_s0 = sand.u32 1, %s1690_s16   ;;  %p2468_p6 = scmp.ne.s32.totalorder %s2459_s11, 0 }
  0xfe   : > { %s2217_s10 = sshll.u32 %s401_s0, 3 }
  0xff   : > { %s403_s22 = scalar_lea.vmem [#allocation10], %s2217_s10 }
 0x100   : > { %1673 = dma.done.wait (%p2468_p6), %s391_s2, 128  }
 0x101   : > { %1675 = vsyncadd (%p2468_p6), %s391_s2, 4294967168  ;;  %p2469_p7 = scmp.eq.s32.totalorder %s1882_s28, 0 }
 0x103   : > { %1677 = dma.done.wait (%p2469_p7), [#allocation12], 4096   ;;  %p2470_p10 = pmov %p2469_p7 }
 0x104   : > { %s2471_s25 = sld [smem:[#allocation25_spill]]  ;;  %s2472_s23 = sld [smem:[#allocation26_spill]]  ;;  %v468_v0 = vlaneseq  ;;  %v466_v10 = vld [vmem:[%s2201_s26] sm:$0xff]  ;;  %v467_v11 = vld [vmem:[%s2201_s26 + $0x8] sm:$0xff]  ;;  %v1750_v61 = vmov 0  }
 0x105   : > { %1679 = vsyncadd (%p2470_p10), [#allocation12], 4294963200  ;;  %s2473_s18 = sld [smem:[#allocation40_spill]]  ;;  %v491_v14 = vld [vmem:[%s394_s7] sm:$0xff]  ;;  %v502_v15 = vld [vmem:[%s403_s22] sm:$0xff]  ;;  %715 = vmatprep.mubr.bf16.mxu0 %v1750_v61  ;;  %s2474_s26 = sld [smem:[#allocation41_spill]] }
 0x106   : > { %v2230_v2 = vshrl.u32 %v468_v0, 7  ;;  %v1374_v42 = vld [vmem:[#allocation11 + $0x4] ss:$8 sps:$4 sm:$0xff]   ;;  %v1376_v43 = vld [vmem:[#allocation11] ss:$8 sps:$4 sm:$0xff]   ;;  %s451_s2 = scalar_lea.vmem [#allocation14], %s1141_s13 }
 0x107   : > { %v1377_v44 = vld [vmem:[#allocation11 + $0x14] ss:$8 sps:$4 sm:$0xff]   ;;  %683 = vmatprep.subr.bf16.mxu0 %v1374_v42  ;;  %v1379_v53 = vld [vmem:[#allocation11 + $0x10] ss:$8 sps:$4 sm:$0xff]   ;;  %v1380_v54 = vld [vmem:[#allocation11 + $0x24] ss:$8 sps:$4 sm:$0xff]  }
 0x108   : > { %v470_v5 = vadd.s32 8, %v2230_v2  ;;  %v521_v18 = vsub.s32 1, %v2230_v2  ;;  %v511_v21 = vsub.s32 0, %v2230_v2  ;;  %v531_v22 = vsub.s32 2, %v2230_v2  ;;  %684 = vmatpush1.bf16.msra.mxu0 %v1376_v43  ;;  %v1382_v55 = vld [vmem:[#allocation11 + $0x20] ss:$8 sps:$4 sm:$0xff]  }
 0x109   : > { %685 = vmatprep.subr.bf16.mxu0 %v1377_v44  ;;  %v1383_v56 = vld [vmem:[#allocation11 + $0x34] ss:$8 sps:$4 sm:$0xff]   ;;  %v1385_v57 = vld [vmem:[#allocation11 + $0x30] ss:$8 sps:$4 sm:$0xff]   ;;  %v1386_v58 = vld [vmem:[#allocation11 + $0x44] ss:$8 sps:$4 sm:$0xff]  }
 0x10a   : > { %s1147_s9 = sshll.u32 %s2471_s25, 4  ;;  %s463_s6 = sld [smem:[#allocation4 + %s2472_s23]]  ;;  %v1388_v59 = vld [vmem:[#allocation11 + $0x40] ss:$8 sps:$4 sm:$0xff]   ;;  %v1389_v60 = vld [vmem:[#allocation11 + $0x54] ss:$8 sps:$4 sm:$0xff]  }
 0x10b   : > { %v471_v1 = vstv %s1147_s9  ;;  %s1148_s12 = sadd.s32 4294967288, %s1147_s9  ;;  %s496_s11 = sadd.s32 16, %s1147_s9  ;;  %v2241_v13 = vld [vmem:[%s2473_s18] sm:$0xff]  ;;  %v1392_v63 = vld [vmem:[#allocation11 + $0x64] ss:$8 sps:$4 sm:$0xff]  }
 0x10c   : > { %v486_v3 = vstv %s1148_s12  ;;  %v497_v4 = vstv %s496_s11  ;;  %v472_v6 = vadd.s32 %v471_v1, %v2230_v2  ;;  %v473_v9 = vadd.s32 %v471_v1, %v470_v5  ;;  %686 = vmatpush1.bf16.msra.mxu0 %v1379_v53  ;;  %v1391_v62 = vld [vmem:[#allocation11 + $0x50] ss:$8 sps:$4 sm:$0xff]   ;;  %v1394_v0 = vld [vmem:[#allocation11 + $0x60] ss:$8 sps:$4 sm:$0xff]   ;;  %v1395_v1 = vld [vmem:[#allocation11 + $0x74] ss:$8 sps:$4 sm:$0xff]  }
 0x10d   : > { %v487_v7 = vadd.s32 %v486_v3, %v2230_v2  ;;  %v498_v8 = vadd.s32 %v497_v4, %v2230_v2  ;;  %v522_v23 = vrot.slane %v2241_v13, %v521_v18  ;;  %v512_v24 = vrot.slane %v2241_v13, %v511_v21  ;;  %687 = vmatprep.subr.bf16.mxu0 %v1380_v54  ;;  %v1397_v3 = vld [vmem:[#allocation11 + $0x70] ss:$8 sps:$4 sm:$0xff]   ;;  %v1398_v4 = vld [vmem:[#allocation13 + $0x40] sm:$0xff]   ;;  %s1182_s15 = sshll.u32 %s2471_s25, 1  ;;  %s1183_s24 = sshll.u32 %s2472_s23, 2 }
 0x10e   : > { %v532_v25 = vrot.slane %v2241_v13, %v531_v22  ;;  %v1399_v5 = vld [vmem:[#allocation13] sm:$0xff]   ;;  %1187 = vmatprep.subr.bf16.mxu1 %v1398_v4  ;;  %v591_v42 = vld [vmem:[%s2474_s26] sm:$0x3]  ;;  %s956_s5 = sadd.s32 %s1183_s24, %s1182_s15  ;;  %s959_s7 = sshll.u32 %s451_s2, 4  ;;  %s2292_s7 = int_to_ptr.vmem [resolvable:$true] %s959_s7 }
 0x10f   : > { %vm488_vm0 = vcmp.ge.s32.totalorder %v487_v7, 0  ;;  %vm500_vm1 = vcmp.lt.s32.totalorder %v498_v8, 32  ;;  %1188 = vmatpush3.bf16.msra.mxu1 %v1399_v5  ;;  %v596_v43 = vrot.slane %v591_v42, %v511_v21  ;;  %v600_v44 = vrot.slane %v591_v42, %v521_v18  ;;  %s1184_s1 = sshll.u32 %s956_s5, 7  ;;  %s2475_s22 = sld [smem:[#allocation44_spill]] }
 0x110   : > { %v474_v12 = vstv %s463_s6  ;;  %688 = vmatpush1.bf16.msra.mxu0 %v1382_v55  ;;  %v766_v21 = vsub.s32 5, %v2230_v2  ;;  %s944_s23 = scalar_lea.sflag [#allocation7], %s2195_s3  ;;  %s1578_s6 = scalar_lea.vmem %s2292_s7, 256 }
 0x111   : > { %vm475_vm2 = vcmp.lt.s32.totalorder %v472_v6, %v474_v12  ;;  %vm476_vm3 = vcmp.lt.s32.totalorder %v473_v9, %v474_v12  ;;  %vm489_vm4 = vcmp.lt.s32.totalorder %v487_v7, %v474_v12  ;;  %vm499_vm5 = vcmp.lt.s32.totalorder %v498_v8, %v474_v12  ;;  %689 = vmatprep.subr.bf16.mxu0 %v1383_v56  ;;  %v1400_v6 = vld [vmem:[#allocation13 + $0x48] sm:$0xff]   ;;  %v1402_v8 = vld [vmem:[#allocation13 + $0x50] sm:$0xff]   ;;  %v1406_v12 = vld [vmem:[#allocation13 + $0x60] sm:$0xff]   ;;  %p1579_p2 = scmp.ne.s32.totalorder %s2292_s7, %s1578_s6  ;;  %p2477_p3 = scmp.ne.s32.totalorder %s2442_s29, 0 }
 0x112   : > { %v481_v16 = vsel %vm475_vm2, %v466_v10, 0.0  ;;  %v482_v17 = vsel %vm476_vm3, %v467_v11, 0.0  ;;  %vm490_vm6 = vmand %vm488_vm0, %vm489_vm4  ;;  %v1401_v7 = vld [vmem:[#allocation13 + $0x8] sm:$0xff]   ;;  %1189 = vmatprep.subr.bf16.mxu1 %v1400_v6  ;;  %v1403_v9 = vld [vmem:[#allocation13 + $0x10] sm:$0xff]   ;;  %v767_v18 = vrot.slane %v2241_v13, %v766_v21  ;;  %s1751_s13 = smov [#allocation14]  }
 0x113   : > { %483 = vst [vmem:[#allocation2 + $0x8] sm:$0xff] %v481_v16  ;;  %484 = vst [vmem:[#allocation2 + $0x10] sm:$0xff] %v482_v17  ;;  %v494_v19 = vsel %vm490_vm6, %v491_v14, 0.0  ;;  %v524_v26 = vmul.f32 %v522_v23, %v482_v17  ;;  %v523_v27 = vmul.f32 %v522_v23, %v481_v16  ;;  %1190 = vmatpush3.bf16.msra.mxu1 %v1401_v7  ;;  %v1407_v14 = vld [vmem:[#allocation13 + $0x20] sm:$0xff]   ;;  %p1580_p5 = pnand %p1579_p2, %p2477_p3  ;;  %s1582_s12 = sshll.u32 %s1751_s13, 4  ;;  %s1583_s12 = int_to_ptr.vmem [resolvable:$false] %s1582_s12 }
 0x114   : > { %vm501_vm7 = vmand %vm499_vm5, %vm500_vm1  ;;  %495 = vst [vmem:[#allocation2] sm:$0xff] %v494_v19  ;;  %690 = vmatpush1.bf16.msra.mxu0 %v1385_v57  ;;  %1191 = vmatprep.subr.bf16.mxu1 %v1402_v8  ;;  %s1584_s11 = scalar_lea.vmem %s1583_s12, 512  ;;  %p1585_p13 = scmp.lt.s32.totalorder %s2292_s7, %s1583_s12 }
 0x115   : > { %v505_v20 = vsel %vm501_vm7, %v502_v15, 0.0  ;;  %691 = vmatprep.subr.bf16.mxu0 %v1386_v58  ;;  %v1408_v15 = vld [vmem:[#allocation13 + $0x68] sm:$0xff]   ;;  %s2476_s9 = smov %s2475_s22  ;;  %s2290_s25 = scalar_lea.hbm %s2475_s22, %s1184_s1 }
 0x116   : > { %506 = vst [vmem:[#allocation2 + $0x18] sm:$0xff] %v505_v20  ;;  %p1581_p0 = pneg %p1580_p5  ;;  %p1586_p1 = scmp.lt.s32.totalorder %s1584_s11, %s1578_s6 }
 0x117   : > { %1192 = vmatpush3.bf16.msra.mxu1 %v1403_v9 }
 0x118   : > { %692 = vmatpush1.bf16.msra.mxu0 %v1388_v59  ;;  %p1587_p11 = por %p1586_p1, %p1585_p13 }
 0x119   : > { %693 = vmatprep.subr.bf16.mxu0 %v1389_v60 }
 0x11a   : > { %v527_v28 = vld [vmem:[#allocation2 + $0x9] sm:$0xff]  ;;  %p1588_p8 = pnand %p1587_p11, %p1581_p0 }
 0x11b   : > { %v508_v29 = vld [vmem:[#allocation2 + $0xf] sm:$0xff]  ;;  %v507_v30 = vld [vmem:[#allocation2 + $0x7] sm:$0xff]  ;;  %v533_v33 = vmul.f32 %v532_v25, %v527_v28  ;;  %v570_v28 = vsub.s32 4, %v2230_v2 }
 0x11c   : > { %v514_v31 = vmul.f32 %v512_v24, %v508_v29  ;;  %v513_v32 = vmul.f32 %v512_v24, %v507_v30  ;;  %694 = vmatpush1.bf16.msra.mxu0 %v1391_v62  ;;  %v564_v24 = vsub.s32 3, %v2230_v2 }
 0x11d   : > { %v528_v34 = vld [vmem:[#allocation2 + $0x11] sm:$0xff]  ;;  %695 = vmatprep.subr.bf16.mxu0 %v1392_v63 }
 0x11e   : > { %v526_v35 = vadd.f32 %v524_v26, %v514_v31  ;;  %v534_v36 = vmul.f32 %v532_v25, %v528_v34  ;;  %v525_v37 = vadd.f32 %v523_v27, %v513_v32  ;;  %v565_v27 = vrot.slane %v2241_v13, %v564_v24 }
 0x11f   : > { %v571_v32 = vrot.slane %v2241_v13, %v570_v28  ;;  %v937_v24 = vsub.s32 7, %v2230_v2 }
 0x120   : > { %v535_v38 = vadd.f32 %v533_v33, %v525_v37  ;;  %v536_v39 = vadd.f32 %v534_v36, %v526_v35  ;;  %696 = vmatpush1.bf16.msra.mxu0 %v1394_v0  ;;  %v1409_v37 = vld [vmem:[#allocation13 + $0x28] sm:$0xff]  }
 0x121   : > { %697 = vmatprep.subr.bf16.mxu0 %v1395_v1 }
 0x122   : > { %v537_v40 = vadd.f32 %v535_v38, %v466_v10  ;;  %v538_v41 = vadd.f32 %v536_v39, %v467_v11  ;;  %v1404_v10 = vld [vmem:[#allocation13 + $0x58] sm:$0xff]   ;;  %v1410_v38 = vld [vmem:[#allocation13 + $0x70] sm:$0xff]  }
 0x123   : > { %v1405_v11 = vld [vmem:[#allocation13 + $0x18] sm:$0xff]   ;;  %1193 = vmatprep.subr.bf16.mxu1 %v1404_v10  ;;  %v1411_v39 = vld [vmem:[#allocation13 + $0x30] sm:$0xff]  }
 0x124   : > { %539 = vadd.xlane.f32.xlu0 %v537_v40  ;;  %698 = vmatpush1.bf16.msra.mxu0 %v1397_v3 }
 0x125   : > { %1194 = vmatpush3.bf16.msra.mxu1 %v1405_v11 }
 0x126   : > { %1195 = vmatprep.subr.bf16.mxu1 %v1406_v12 }
 0x128   : > { %541 = vadd.xlane.f32.xlu0 %v538_v41 }
 0x129   : > { %1196 = vmatpush3.bf16.msra.mxu1 %v1407_v14 }
 0x12a   : > { %1197 = vmatprep.subr.bf16.mxu1 %v1408_v15 }
 0x12d   : > { %1198 = vmatpush3.bf16.msra.mxu1 %v1409_v37 }
 0x12e   : > { %1199 = vmatprep.subr.bf16.mxu1 %v1410_v38 }
 0x131   : > { %1200 = vmatpush3.bf16.msra.mxu1 %v1411_v39 }
 0x1b1   : > { %v540_v45 = vpop.xlane.xlu0 %539 }
 0x1b2   : > { %v544_v46 = vmul.f32 0.0078125, %v540_v45 }
 0x1b4   : > { %v2256_v47 = vsub.f32 %v537_v40, %v544_v46  ;;  %v1412_v40 = vld [vmem:[#allocation13 + $0x78] sm:$0xff]  }
 0x1b5   : > { %v542_v48 = vpop.xlane.xlu0 %541  ;;  %1201 = vmatprep.subr.bf16.mxu1 %v1412_v40 }
 0x1b6   : > { %v545_v49 = vmul.f32 0.0078125, %v542_v48  ;;  %v548_v50 = vmul.f32 %v2256_v47, %v2256_v47 }
 0x1b8   : > { %v2260_v51 = vsub.f32 %v538_v41, %v545_v49  ;;  %550 = vadd.xlane.f32.xlu1 %v548_v50  ;;  %v1413_v41 = vld [vmem:[#allocation13 + $0x38] sm:$0xff]  }
 0x1b9   : > { %1202 = vmatpush3.bf16.msra.mxu1 %v1413_v41 }
 0x1ba   : > { %v549_v52 = vmul.f32 %v2260_v51, %v2260_v51 }
 0x1bc   : > { %552 = vadd.xlane.f32.xlu1 %v549_v52 }
 0x245   : > { %v551_v16 = vpop.xlane.xlu1 %550 }
 0x246   : > { %v554_v17 = vmul.f32 0.0078125, %v551_v16 }
 0x248   : > { %v556_v19 = vadd.f32 1e-05, %v554_v17 }
 0x249   : > { %v553_v20 = vpop.xlane.xlu1 %552 }
 0x24a   : > { %1414 = vrsqrt.f32 %v556_v19  ;;  %v555_v22 = vmul.f32 0.0078125, %v553_v20 }
 0x24c   : > { %v557_v23 = vadd.f32 1e-05, %v555_v22 }
 0x24e   : > { %1416 = vrsqrt.f32 %v557_v23  ;;  %v931_v23 = vsub.s32 6, %v2230_v2 }
 0x254   : > { %v1415_v25 = vpop.eup %1414 }
 0x255   : > { %v560_v26 = vmul.f32 %v1415_v25, %v2256_v47  ;;  %v932_v25 = vrot.slane %v2241_v13, %v931_v23 }
 0x257   : > { %v566_v31 = vmul.f32 %v565_v27, %v560_v26 }
 0x258   : > { %v1417_v29 = vpop.eup %1416 }
 0x259   : > { %v561_v30 = vmul.f32 %v1417_v29, %v2260_v51  ;;  %v572_v34 = vadd.f32 %v571_v32, %v566_v31 }
 0x25b   : > { %v567_v33 = vmul.f32 %v565_v27, %v561_v30  ;;  %v938_v27 = vrot.slane %v2241_v13, %v937_v24 }
 0x25d   : > { %v573_v35 = vadd.f32 %v571_v32, %v567_v33 }
 0x25f   : > { %v574_v36 = vpack.c.bf16 %v573_v35, %v572_v34 }
 0x261   : > { %716 = vmatmul.mubr.bf16.vlgmr.msra.gmra.mrb[0].mxu0 %v574_v36 }
 0x334   : > { %v717_v45 = vpop.f32.mrb[0].mxu0 }
 0x335   : > { %v718_v46 = vadd.f32 %v717_v45, %v596_v43  ;;  %v719_v47 = vpop.f32.mrb[1].mxu0 }
 0x336   : > { %v720_v48 = vadd.f32 %v719_v47, %v600_v44  ;;  %v721_v49 = vpop.f32.mrb[2].mxu0 }
 0x337   : > { %v722_v50 = vadd.f32 %v721_v49, %v596_v43  ;;  %v723_v51 = vpop.f32.mrb[3].mxu0  ;;  %v726_v53 = vmax.f32 %v718_v46, 0.0 }
 0x338   : > { %v724_v52 = vadd.f32 %v723_v51, %v600_v44  ;;  %v727_v55 = vmax.f32 %v720_v48, 0.0 }
 0x339   : > { %v728_v54 = vmax.f32 %v722_v50, 0.0 }
 0x33a   : > { %v729_v56 = vmax.f32 %v724_v52, 0.0 }
 0x33b   : > { %v730_v57 = vpack.c.bf16 %v728_v54, %v726_v53 }
 0x33c   : > { %v731_v58 = vpack.c.bf16 %v729_v56, %v727_v55 }
 0x33e   : > { %896 = vmatprep.mubr.bf16.mxu1 %v731_v58 }
 0x33f   : > { %897 = vmatmul.mubr.bf16.vlgmr.msra.gmra.mrb[0].mxu1 %v730_v57 }
 0x412   : > { %v1203_v59 = vpop.f32.mrb[0].mxu1 }
 0x413   : > { %v1204_v60 = vpop.f32.mrb[1].mxu1 }
 0x414   : > { %v1205_v61 = vadd.f32 %v1204_v60, %v1203_v59  ;;  %v1206_v62 = vpop.f32.mrb[2].mxu1 }
 0x415   : > { %v1207_v63 = vpop.f32.mrb[3].mxu1 }
 0x416   : > { %v899_v0 = vadd.f32 %v1205_v61, %v767_v18  ;;  %v1208_v1 = vadd.f32 %v1207_v63, %v1206_v62 }
 0x418   : > { %v902_v3 = vadd.f32 %v1208_v1, %v767_v18  ;;  %v905_v4 = vadd.f32 %v899_v0, %v572_v34 }
 0x41a   : > { %907 = vadd.xlane.f32.xlu0 %v905_v4  ;;  %v906_v5 = vadd.f32 %v902_v3, %v573_v35 }
 0x41c   : > { %909 = vadd.xlane.f32.xlu1 %v906_v5 }
 0x4a7   : > { %v908_v6 = vpop.xlane.xlu0 %907 }
 0x4a8   : > { %v911_v7 = vmul.f32 0.0078125, %v908_v6 }
 0x4a9   : > { %v910_v8 = vpop.xlane.xlu1 %909 }
 0x4aa   : > { %v913_v9 = vsub.f32 %v905_v4, %v911_v7  ;;  %v912_v10 = vmul.f32 0.0078125, %v910_v8 }
 0x4ac   : > { %v914_v11 = vsub.f32 %v906_v5, %v912_v10  ;;  %v915_v12 = vmul.f32 %v913_v9, %v913_v9 }
 0x4ae   : > { %917 = vadd.xlane.f32.xlu0 %v915_v12  ;;  %v916_v14 = vmul.f32 %v914_v11, %v914_v11 }
 0x4b0   : > { %919 = vadd.xlane.f32.xlu1 %v916_v14 }
 0x53b   : > { %v918_v15 = vpop.xlane.xlu0 %917 }
 0x53c   : > { %v921_v16 = vmul.f32 0.0078125, %v918_v15 }
 0x53d   : > { %v920_v17 = vpop.xlane.xlu1 %919 }
 0x53e   : > { %v923_v19 = vadd.f32 1e-05, %v921_v16  ;;  %v922_v20 = vmul.f32 0.0078125, %v920_v17 }
 0x540   : > { %1418 = vrsqrt.f32 %v923_v19  ;;  %v924_v22 = vadd.f32 1e-05, %v922_v20 }
 0x542   : > { %1420 = vrsqrt.f32 %v924_v22 }
 0x54a   : > { %v1419_v26 = vpop.eup %1418 }
 0x54b   : > { %v927_v28 = vmul.f32 %v1419_v26, %v913_v9 }
 0x54c   : > { %v1421_v29 = vpop.eup %1420 }
 0x54d   : > { %v933_v30 = vmul.f32 %v932_v25, %v927_v28  ;;  %v928_v31 = vmul.f32 %v1421_v29, %v914_v11 }
 0x54f   : > { %v939_v32 = vadd.f32 %v938_v27, %v933_v30  ;;  %v934_v2 = vmul.f32 %v932_v25, %v928_v31 }
 0x551   : > { %v940_v13 = vadd.f32 %v938_v27, %v934_v2  ;;  %941 = vst [vmem:[%s451_s2] sm:$0xff] %v939_v32 }
 0x553   : > { %942 = vst [vmem:[%s451_s2 + $0x8] sm:$0xff] %v940_v13 }
 0x554   : > { %1591 = shalt.err (!%p1588_p8)
}
 0x555   : > { %s1592_s28 = scalar_lea.hbm %s2290_s25, 256  ;;  %s1596_s30 = scalar_lea.hbm %s2476_s9, 1024 }
 0x556   : > { %p1593_p12 = scmp.ne.s32.totalorder %s2290_s25, %s1592_s28  ;;  %p1597_p6 = scmp.lt.u32.totalorder %s2290_s25, %s2476_s9 }
 0x557   : > { %p1598_p7 = scmp.lt.u32.totalorder %s1596_s30, %s1592_s28  ;;  %p1600_p2 = scmp.lt.u32.totalorder %s1592_s28, %s2290_s25 }
 0x558   : > { %p1594_p9 = pnand %p1593_p12, %p2477_p3 }
 0x559   : > { %p1599_p10 = por %p1598_p7, %p1597_p6 }
 0x55a   : > { %p1595_p4 = pneg %p1594_p9 }
 0x55b   : > { %p1601_p5 = por %p1600_p2, %p1599_p10 }
 0x55d   : > { %p1602_p0 = pnand %p1601_p5, %p1595_p4 }
 0x55f   : > { %1605 = shalt.err (!%p1602_p0)
}
 0x560   : > { %s1752_s15 = smov 128   ;;  %s1753_s24 = smov 8  }
 0x561   : > { %1223 = dma.vmem_to_hbm [thread:$0]  (%p2477_p3), %s2292_s7, 256, %s2290_s25, %s944_s23, %s1752_s15, %s1752_s15, %s1753_s24  }
 0x562 PF: > { %s2478_s5 = sld [smem:[#allocation36_spill]]  ;;  %p1251_p13 = scmp.ge.s32.totalorder %s1738_s27, 2 }
 0x563   : > { %s974_s1 = sand.u32 1, %s1710_s20  }
 0x564   : > { %s975_s2 = scalar_lea.sflag [#allocation7], %s974_s1 }
 0x568   : > { %p2479_p1 = scmp.ne.s32.totalorder %s2478_s5, 0 }
 0x56a   : > { %p1243_p11 = pnand %p1251_p13, %p2479_p1 }
 0x56c   : > { %1681 = dma.done.wait (!%p1243_p11), %s975_s2, 256  }
 0x56d   : > { %1683 = vsyncadd (!%p1243_p11), %s975_s2, 4294967040  ;;  %s32_s27 = sadd.s32 1, %s1738_s27   ;;  %s2481_s18 = sld [smem:[#allocation22_spill]] }
 0x56e   : > { %p2323_p8 = scmp.ge.s32.totalorder %s32_s27, 6   ;;  %s2482_s29 = sld [smem:[#allocation23_spill]] }
 0x56f   : > { %s2483_s3 = sld [smem:[#allocation34_spill]]  ;;  %s2484_s7 = sld [smem:[#allocation24_spill]] }
 0x570   : > { %s2485_s22 = sld [smem:[#allocation35_spill]]  ;;  %s2486_s23 = sld [smem:[#allocation27_spill]] }
 0x571   : > { %s2487_s24 = sld [smem:[#allocation28_spill]]  ;;  %s2488_s25 = sld [smem:[#allocation30_spill]] }
 0x572   : > { %s2489_s26 = sld [smem:[#allocation31_spill]]  ;;  %s2491_s15 = smov %s1690_s16 }
 0x573   : > { %s2492_s16 = smov %s1694_s17  ;;  %s2493_s17 = smov %s2149_s19 }
 0x574   : > { %s2494_s19 = smov %s2482_s29  ;;  %s2496_s20 = smov %s1714_s21 }
 0x575   : > { %s2495_s0 = smov %s2483_s3  ;;  %s2497_s21 = smov %s2484_s7 }
 0x576   :  { %31 = sbr.rel (!%p2323_p8) target bundleno = 28 (0x1c), region = 125 }
 0x57d   :  { %980 = vsyncpa [#allocation6], 1 }
 0x57e   :  { %982 = vsyncpa [#allocation6 + $0x1], 1 }
 0x57f   :  { %983 = vsyncpa [#allocation9], 1 }
 0x580   :  { %985 = vsyncpa [#allocation9 + $0x1], 1 }
 0x581   :  { %986 = vsyncpa [#allocation12], 1 }
 0x582   :  { %987 = vsyncpa [#allocation7], 1 }
 0x583   :  { %989 = vsyncpa [#allocation7 + $0x1], 1 }

</bundles_post_ra>
